<compile_context>
chip_gen: v7x
topology: tpu7x:2x2x1
jax: 0.10.0
libtpu: 0.0.40
codegen_flags: <defaults>
</compile_context>

<pallas_src>
import jax
import jax.numpy as jnp
from jax.experimental import pallas as pl
from jax.experimental.pallas import tpu as pltpu


# Minimum sublane count per itemsize so packed dtypes fill whole vregs.
_MIN_SUBLANES = {1: 32, 2: 16, 4: 8, 8: 8}

# Cap on the lane (column) width of the 2-D view and on block bytes.
_MAX_COLS = 8192
_TARGET_BLOCK_BYTES = 2 << 20  # 2 MiB per block


def _copy_kernel(x_ref, o_ref):
    # Identity copy of the current tile.
    o_ref[...] = x_ref[...]


def _choose_cols(total, last_dim):
    """Pick a lane-dense column width for the flattened 2-D view."""
    # Prefer the largest multiple of 128 that divides `total` (<= _MAX_COLS):
    # wide unmasked stores, few grid steps.
    for c in range(_MAX_COLS, 127, -128):
        if total % c == 0:
            return c
    # No 128-multiple divisor exists: take the largest divisor <= _MAX_COLS
    # (keeps lanes as busy as arithmetically possible).
    for c in range(min(total, _MAX_COLS), 0, -1):
        if total % c == 0:
            return c
    return max(last_dim, 1)


def _pallas_identity_copy(x2d):
    """Copy a 2-D array through a tiled, lane-dense Pallas TPU kernel."""
    rows, cols = x2d.shape
    itemsize = jnp.dtype(x2d.dtype).itemsize
    min_rows = _MIN_SUBLANES.get(itemsize, 8)

    bytes_per_row = max(1, cols * itemsize)
    # Rows per block targeting ~2 MiB, rounded down to a sublane multiple.
    tile_rows = (_TARGET_BLOCK_BYTES // bytes_per_row) // min_rows * min_rows
    tile_rows = max(min_rows, tile_rows)
    if tile_rows >= rows:
        # Single row-block; block dim == full array dim is always legal.
        tile_rows = rows

    grid = (pl.cdiv(rows, tile_rows),)
    return pl.pallas_call(
        _copy_kernel,
        out_shape=jax.ShapeDtypeStruct((rows, cols), x2d.dtype),
        grid=grid,
        in_specs=[pl.BlockSpec((tile_rows, cols), lambda i: (i, 0))],
        out_specs=pl.BlockSpec((tile_rows, cols), lambda i: (i, 0)),
        compiler_params=pltpu.CompilerParams(
            dimension_semantics=("parallel",),
        ),
    )(x2d)


def squeeze(x, dim=None):
    """Pallas-backed equivalent of torch.squeeze / torch.squeeze(x, dim)."""
    shape = x.shape
    ndim = len(shape)

    # Output shape exactly like torch.squeeze.
    if dim is None:
        out_shape = tuple(s for s in shape if s != 1)
    else:
        d = dim if dim >= 0 else dim + ndim
        if not (0 <= d < ndim):
            raise ValueError(f"dim {dim} out of range for shape {shape}")
        if shape[d] == 1:
            out_shape = shape[:d] + shape[d + 1:]
        else:
            # torch returns the input unchanged: pure no-op, skip any copy.
            return x

    if out_shape == shape:
        # Nothing to squeeze; identical result, no data movement needed.
        return x

    total = 1
    for s in shape:
        total *= s
    if total == 0:
        # Degenerate empty tensor: no data to copy.
        return jnp.reshape(x, out_shape)

    # Flatten to a lane-dense 2-D view (row-major reshape preserves element
    # order, so the final reshape to the squeezed shape matches torch exactly).
    cols = _choose_cols(total, shape[-1] if ndim >= 1 else 1)
    x2d = jnp.reshape(x, (total // cols, cols))

    y2d = _pallas_identity_copy(x2d)
    return jnp.reshape(y2d, out_shape)


if __name__ == "__main__":
    key = jax.random.PRNGKey(0)

    # Input consistent with an NCHW conv-style tensor carrying size-1 dims.
    x = jax.random.normal(key, (2, 4, 1, 16, 16), dtype=jnp.float32)

    # Case 1: dim=None -> remove all size-1 dims.
    y_all = jax.block_until_ready(squeeze(x, dim=None))
    assert y_all.shape == (2, 4, 16, 16), y_all.shape
    assert jnp.array_equal(y_all, jnp.squeeze(x))

    # Case 2: explicit dim that is size 1.
    y_dim = jax.block_until_ready(squeeze(x, dim=2))
    assert y_dim.shape == (2, 4, 16, 16), y_dim.shape
    assert jnp.array_equal(y_dim, jnp.squeeze(x, axis=2))

    # Case 3: explicit dim that is NOT size 1 -> unchanged (torch semantics).
    y_noop = jax.block_until_ready(squeeze(x, dim=1))
    assert y_noop.shape == x.shape, y_noop.shape
    assert jnp.array_equal(y_noop, x)

    # Case 4: larger lane-dense tensor exercising the tiled grid path.
    key2 = jax.random.PRNGKey(0)
    xb = jax.random.normal(key2, (8, 1, 256, 128), dtype=jnp.float32)
    yb = jax.block_until_ready(squeeze(xb, dim=None))
    assert yb.shape == (8, 256, 128), yb.shape
    assert jnp.array_equal(yb, jnp.squeeze(xb))

    # Case 5: odd shape with no 128-multiple divisor + packed dtype (bf16).
    xc = jax.random.normal(key, (3, 1, 5, 7), dtype=jnp.bfloat16)
    yc = jax.block_until_ready(squeeze(xc, dim=1))
    assert yc.shape == (3, 5, 7), yc.shape
    assert jnp.array_equal(yc, jnp.squeeze(xc, axis=1))

    print("KERNEL_OK")
</pallas_src>

<mosaic_0001>
module attributes {stable_mosaic.version = 11 : i64} {
  func.func @_copy_kernel(%arg0: i32, %arg1: memref<1x2048xf32, #tpu.memory_space<vmem>>, %arg2: memref<1x2048xf32, #tpu.memory_space<vmem>>) attributes {dimension_semantics = [#tpu.dimension_semantics<parallel>], iteration_bounds = array<i64: 1>, scalar_prefetch = 0 : i64, scratch_operands = 0 : i64, tpu.core_type = #tpu.core_type<tc>, window_params = [{transform_indices = @transform_0, window_bounds = array<i64: 1, 2048>}, {transform_indices = @transform_1, window_bounds = array<i64: 1, 2048>}]} {
    %c0 = arith.constant 0 : index
    %c0_0 = arith.constant 0 : index
    %0 = vector.load %arg1[%c0, %c0_0] : memref<1x2048xf32, #tpu.memory_space<vmem>>, vector<1x2048xf32>
    %c0_1 = arith.constant 0 : index
    %c0_2 = arith.constant 0 : index
    %1 = vector.load %arg2[%c0_1, %c0_2] : memref<1x2048xf32, #tpu.memory_space<vmem>>, vector<1x2048xf32>
    tpu.vector_store %arg2[%c0_1, %c0_2], %0 {strides = array<i32>} : memref<1x2048xf32, #tpu.memory_space<vmem>>, vector<1x2048xf32>,
    return
  }
  func.func @transform_0(%arg0: i32) -> (i32, i32) {
    %c0_i32 = arith.constant 0 : i32
    %c0_i32_0 = arith.constant 0 : i32
    return %arg0, %c0_i32 : i32, i32
  }
  func.func @transform_1(%arg0: i32) -> (i32, i32) {
    %c0_i32 = arith.constant 0 : i32
    %c0_i32_0 = arith.constant 0 : i32
    return %arg0, %c0_i32 : i32, i32
  }
}

</mosaic_0001>

<bundles_post_ra>
// kernel: tpu_custom_call.1
= control target key start
LH: loop header
LB: loop body
LE: loop exit
PB: predicated region body
PF: predicated region fallthrough
CT: control target
= control target key end

     0   :  { %6 = vsyncpa [#allocation3], 0  ;;  %s126_s0 = inlined_call_operand.hbm [shape: f32[1,2048], index: 0, kind: input, shape index: {}]   ;;  %s127_s1 = inlined_call_operand.hbm [shape: f32[1,2048], index: 1, kind: output, shape index: {}]  }
   0x1   :  { %7 = vsyncpa [#allocation4], 0  ;;  %s90_s6 = smov [#allocation2]   ;;  %s42_s10 = scalar_lea.hbm %s126_s0, 256 }
   0x2   :  { %s14_s7 = sshll.u32 %s90_s6, 4  ;;  %p43_p0 = scmp.ne.s32.totalorder %s126_s0, %s42_s10  ;;  %s15_s7 = int_to_ptr.vmem [resolvable:$true] %s14_s7 }
   0x3   :  { %p46_p1 = scmp.lt.u32.totalorder %s42_s10, %s126_s0 }
   0x5   :  { %p48_p2 = pnand %p46_p1, %p43_p0 }
   0x7   :  { %51 = shalt.err (!%p48_p2)
}
   0x8   :  { %s52_s15 = scalar_lea.vmem %s15_s7, 256  ;;  %p57_p4 = scmp.lt.s32.totalorder %s15_s7, %s15_s7 }
   0x9   :  { %p53_p3 = scmp.ne.s32.totalorder %s15_s7, %s52_s15  ;;  %p58_p5 = scmp.lt.s32.totalorder %s52_s15, %s52_s15 }
   0xb   :  { %p59_p6 = por %p58_p5, %p57_p4 }
   0xd   :  { %p60_p7 = pnand %p59_p6, %p53_p3 }
   0xf   :  { %63 = shalt.err (!%p60_p7)
}
  0x10   :  { %17 = dma.hbm_to_vmem [thread:$0]  %s126_s0, 256, %s15_s7, [#allocation3]  }
  0x11   :  { %86 = dma.done.wait [#allocation3], 256  }
  0x12   :  { %87 = vsyncadd [#allocation3], 4294967040  ;;  %s91_s18 = smov [#allocation5]   ;;  %v21_v0 = vld [vmem:[#allocation2] sm:$0xff]  ;;  %v22_v1 = vld [vmem:[#allocation2 + $0x8] sm:$0xff] }
  0x13   :  { %s31_s19 = sshll.u32 %s91_s18, 4  ;;  %23 = vst [vmem:[#allocation5] sm:$0xff] %v21_v0  ;;  %24 = vst [vmem:[#allocation5 + $0x8] sm:$0xff] %v22_v1  ;;  %s32_s19 = int_to_ptr.vmem [resolvable:$true] %s31_s19 }
  0x14   :  { %s64_s20 = scalar_lea.vmem %s32_s19, 256  ;;  %p69_p9 = scmp.lt.s32.totalorder %s32_s19, %s32_s19 }
  0x15   :  { %p65_p8 = scmp.ne.s32.totalorder %s32_s19, %s64_s20  ;;  %p70_p10 = scmp.lt.s32.totalorder %s64_s20, %s64_s20 }
  0x17   :  { %p71_p11 = por %p70_p10, %p69_p9 }
  0x19   :  { %p72_p12 = pnand %p71_p11, %p65_p8 }
  0x1b   :  { %75 = shalt.err (!%p72_p12)
}
  0x1c   :  { %s76_s0 = scalar_lea.hbm %s127_s1, 256 }
  0x1d   :  { %p77_p13 = scmp.ne.s32.totalorder %s127_s1, %s76_s0  ;;  %p80_p0 = scmp.lt.u32.totalorder %s76_s0, %s127_s1 }
  0x1f   :  { %p82_p1 = pnand %p80_p0, %p77_p13 }
  0x21   :  { %85 = shalt.err (!%p82_p1)
}
  0x22   :  { %34 = dma.vmem_to_hbm [thread:$0]  %s32_s19, 256, %s127_s1, [#allocation4]  }
  0x23   :  { %88 = dma.done.wait [#allocation4], 256  }
  0x24   :  { %89 = vsyncadd [#allocation4], 4294967040 }
  0x25   :  { %38 = vsyncpa [#allocation3], 1 }
  0x26   :  { %39 = vsyncpa [#allocation4], 1 }

</bundles_post_ra>
